<compile_context>
chip_gen: v7x
topology: tpu7x:2x2x1
jax: 0.10.0
libtpu: 0.0.40
codegen_flags: <defaults>
</compile_context>

<pallas_src>
import jax
import jax.numpy as jnp
from jax.experimental import pallas as pl
from jax.experimental.pallas import tpu as pltpu

_LANES = 128
_ROW_TILE_MAX = 4096            # 4096 x 128 f32 = 2 MiB per operand block
_VMEM_LIMIT = 32 * 1024 * 1024  # safe default on v5e/v6e/v7x


def _cdiv(a, b):
    return (a + b - 1) // b


def _round_up(n, m):
    return _cdiv(n, m) * m


# ----------------------------------------------------------------------------
# Generic fused residual add: y = x + fx  (fx already computed by plain JAX)
# ----------------------------------------------------------------------------
def _residual_add_kernel(x_ref, fx_ref, o_ref):
    # y = x + fn(x) -- elementwise add on the VPU, whole tile at once.
    o_ref[...] = x_ref[...] + fx_ref[...]


@jax.jit
def residual_add(x, fx):
    """Pallas-accelerated y = x + fx for arbitrary (matching) shapes."""
    assert x.shape == fx.shape and x.dtype == fx.dtype
    n = x.size
    itemsize = jnp.dtype(x.dtype).itemsize
    # dtype-aware sublane multiple: 8 rows for 4-byte, 16 for 2-byte, 32 for 1-byte
    sub = max(8, 32 // itemsize)

    # rows of 128 lanes, padded up to the sublane multiple
    rows = _round_up(_cdiv(n, _LANES), sub)
    if rows <= _ROW_TILE_MAX:
        row_tile = rows                         # single big block, grid = 1
        num_tiles = 1
    else:
        # balanced tiles: keeps padding to at most one sublane group instead
        # of up to a whole 4096-row tile (which forced a full pad copy).
        num_tiles = _cdiv(rows, _ROW_TILE_MAX)
        row_tile = _round_up(_cdiv(rows, num_tiles), sub)
        rows = row_tile * num_tiles

    pad = rows * _LANES - n
    xf = x.reshape(-1)
    ff = fx.reshape(-1)
    if pad:
        xf = jnp.pad(xf, (0, pad))
        ff = jnp.pad(ff, (0, pad))
    x2d = xf.reshape(rows, _LANES)
    f2d = ff.reshape(rows, _LANES)

    spec = pl.BlockSpec((row_tile, _LANES), lambda i: (i, 0))
    y2d = pl.pallas_call(
        _residual_add_kernel,
        out_shape=jax.ShapeDtypeStruct((rows, _LANES), x.dtype),
        grid_spec=pltpu.PrefetchScalarGridSpec(
            num_scalar_prefetch=0,
            grid=(num_tiles,),
            in_specs=[spec, spec],
            out_specs=spec,
        ),
        compiler_params=pltpu.CompilerParams(
            dimension_semantics=("parallel",),
            vmem_limit_bytes=_VMEM_LIMIT,
        ),
        cost_estimate=pl.CostEstimate(
            flops=n, transcendentals=0, bytes_accessed=3 * n * itemsize),
    )(x2d, f2d)

    if pad:
        return y2d.reshape(-1)[:n].reshape(x.shape)
    return y2d.reshape(x.shape)


# ----------------------------------------------------------------------------
# Fully fused path for the example inner block: y = x + (W @ x + b)   (1x1 conv)
# ----------------------------------------------------------------------------
def _make_fused_pw_kernel(channels, use_mxu):
    def kernel(x_ref, w_ref, b_ref, o_ref):
        xf = x_ref[0].astype(jnp.float32)              # (C, T) tile of one batch
        if use_mxu:
            # one MXU matmul per spatial tile
            y = jnp.dot(w_ref[...].astype(jnp.float32), xf,
                        preferred_element_type=jnp.float32)
        else:
            # tiny C: MXU would be badly underutilized -> VPU broadcast-MAC
            w = w_ref[...].astype(jnp.float32)          # (C, C)
            y = w[:, 0:1] * xf[0:1, :]
            for c in range(1, channels):
                y = y + w[:, c:c + 1] * xf[c:c + 1, :]
        y = y + b_ref[...].astype(jnp.float32)          # (C, 1) bias broadcast
        o_ref[0] = (xf + y).astype(o_ref.dtype)         # fused residual add
    return kernel


@jax.jit
def _fused_pw_conv_residual(x, w, b2d):
    """y = x + (pointwise_conv(x; w) + b), fused in one Pallas kernel. NCHW."""
    B, C, H, W = x.shape
    hw = H * W
    itemsize = jnp.dtype(x.dtype).itemsize

    # spatial tile: multiple of 128 lanes, capped so one (C, T) f32 block <= ~2 MiB
    t_cap = max(_LANES, (2 * 1024 * 1024 // (max(C, 1) * 4)) // _LANES * _LANES)
    T = min(t_cap, _round_up(hw, _LANES))
    hw_pad = _round_up(hw, T)

    x3 = x.reshape(B, C, hw)
    if hw_pad != hw:
        x3 = jnp.pad(x3, ((0, 0), (0, 0), (0, hw_pad - hw)))

    kernel = _make_fused_pw_kernel(C, use_mxu=(C >= 8))

    y3 = pl.pallas_call(
        kernel,
        out_shape=jax.ShapeDtypeStruct((B, C, hw_pad), x.dtype),
        grid_spec=pltpu.PrefetchScalarGridSpec(
            num_scalar_prefetch=0,
            grid=(B, hw_pad // T),
            in_specs=[
                pl.BlockSpec((1, C, T), lambda b, s: (b, 0, s)),
                pl.BlockSpec((C, C), lambda b, s: (0, 0)),   # resident across grid
                pl.BlockSpec((C, 1), lambda b, s: (0, 0)),   # resident across grid
            ],
            out_specs=pl.BlockSpec((1, C, T), lambda b, s: (b, 0, s)),
        ),
        compiler_params=pltpu.CompilerParams(
            dimension_semantics=("parallel", "parallel"),
            vmem_limit_bytes=_VMEM_LIMIT,
        ),
        cost_estimate=pl.CostEstimate(
            flops=2 * B * C * C * hw_pad + 3 * B * C * hw_pad,
            transcendentals=0,
            bytes_accessed=(2 * B * C * hw_pad + C * C + C) * itemsize),
    )(x3, w, b2d)

    if hw_pad != hw:
        y3 = y3[:, :, :hw]
    return y3.reshape(B, C, H, W)


# ----------------------------------------------------------------------------
# Module + example inner block
# ----------------------------------------------------------------------------
class Residual:
    """JAX/Pallas port of the PyTorch Residual module: forward(x) = x + fn(x)."""

    def __init__(self, fn):
        self.fn = fn

    def __call__(self, x, *args, **kwargs):
        fused = getattr(self.fn, "fused_residual", None)
        if fused is not None and not args and not kwargs:
            # fn + residual fully fused in one Pallas kernel (no fx in HBM)
            return fused(x)
        fx = self.fn(x, *args, **kwargs)
        return residual_add(x, fx)


def make_pointwise_conv_fn(channels, key):
    """Deterministic example inner block: 1x1 conv over NCHW."""
    wkey, bkey = jax.random.split(key)
    w = jax.random.normal(wkey, (channels, channels), jnp.float32) * 0.05
    b = jax.random.normal(bkey, (channels,), jnp.float32) * 0.01

    def fn(x):  # x: [B, C, H, W]  (plain-JAX reference implementation)
        y = jnp.einsum("oc,bchw->bohw", w, x)
        return y + b[None, :, None, None]

    # fused Pallas implementation of x + fn(x)
    fn.fused_residual = lambda x: _fused_pw_conv_residual(
        x, w, b.reshape(channels, 1))
    return fn


if __name__ == "__main__":
    key = jax.random.PRNGKey(0)
    xkey, pkey, xkey2, pkey2 = jax.random.split(key, 4)

    # --- test 1: small C (VPU broadcast-MAC fused path) + generic add path ---
    B, C, H, W = 2, 4, 16, 16
    x = jax.random.normal(xkey, (B, C, H, W), jnp.float32)
    fn = make_pointwise_conv_fn(C, pkey)
    block = Residual(fn)

    y = jax.block_until_ready(block(x))                       # fused kernel
    y_generic = jax.block_until_ready(residual_add(x, fn(x)))  # generic kernel
    y_ref = x + fn(x)

    assert y.shape == (B, C, H, W)
    assert jnp.allclose(y, y_ref, atol=1e-5, rtol=1e-5)
    assert jnp.allclose(y_generic, y_ref, atol=1e-5, rtol=1e-5)

    # --- test 2: larger C exercising the MXU fused path ---
    B2, C2, H2, W2 = 2, 64, 8, 8
    x2 = jax.random.normal(xkey2, (B2, C2, H2, W2), jnp.float32)
    fn2 = make_pointwise_conv_fn(C2, pkey2)
    block2 = Residual(fn2)

    y2 = jax.block_until_ready(block2(x2))
    y2_ref = x2 + fn2(x2)
    # loose tolerance: f32 matmuls on the MXU may use reduced-precision passes
    assert jnp.allclose(y2, y2_ref, atol=5e-2, rtol=5e-2)

    print("KERNEL_OK")
</pallas_src>

<mosaic_0001>
module attributes {stable_mosaic.version = 11 : i64} {
  func.func @kernel(%arg0: i32, %arg1: i32, %arg2: memref<1x4x256xf32, #tpu.memory_space<vmem>>, %arg3: memref<4x4xf32, #tpu.memory_space<vmem>>, %arg4: memref<4x1xf32, #tpu.memory_space<vmem>>, %arg5: memref<1x4x256xf32, #tpu.memory_space<vmem>>) attributes {dimension_semantics = [#tpu.dimension_semantics<parallel>, #tpu.dimension_semantics<parallel>], iteration_bounds = array<i64: 2, 1>, scalar_prefetch = 0 : i64, scratch_operands = 0 : i64, tpu.core_type = #tpu.core_type<tc>, window_params = [{transform_indices = @transform_0, window_bounds = array<i64: 1, 4, 256>}, {pipeline_mode = #tpu.pipeline_mode<synchronous>, transform_indices = @transform_1, window_bounds = array<i64: 4, 4>}, {pipeline_mode = #tpu.pipeline_mode<synchronous>, transform_indices = @transform_2, window_bounds = array<i64: 4, 1>}, {transform_indices = @transform_3, window_bounds = array<i64: 1, 4, 256>}]} {
    %c0 = arith.constant 0 : index
    %c0_0 = arith.constant 0 : index
    %c0_1 = arith.constant 0 : index
    %0 = vector.load %arg2[%c0, %c0_0, %c0_1] : memref<1x4x256xf32, #tpu.memory_space<vmem>>, vector<1x4x256xf32>
    %1 = vector.shape_cast %0 : vector<1x4x256xf32> to vector<4x256xf32>
    %c0_2 = arith.constant 0 : index
    %c0_3 = arith.constant 0 : index
    %2 = vector.load %arg3[%c0_2, %c0_3] : memref<4x4xf32, #tpu.memory_space<vmem>>, vector<4x4xf32>
    %3 = vector.extract_strided_slice %2 {offsets = [0, 0], sizes = [4, 1], strides = [1, 1]} : vector<4x4xf32> to vector<4x1xf32>
    %4 = vector.extract_strided_slice %1 {offsets = [0, 0], sizes = [1, 256], strides = [1, 1]} : vector<4x256xf32> to vector<1x256xf32>
    %5 = vector.broadcast %3 : vector<4x1xf32> to vector<4x256xf32>
    %6 = vector.broadcast %4 : vector<1x256xf32> to vector<4x256xf32>
    %7 = arith.mulf %5, %6 : vector<4x256xf32>
    %8 = vector.extract_strided_slice %2 {offsets = [0, 1], sizes = [4, 1], strides = [1, 1]} : vector<4x4xf32> to vector<4x1xf32>
    %9 = vector.extract_strided_slice %1 {offsets = [1, 0], sizes = [1, 256], strides = [1, 1]} : vector<4x256xf32> to vector<1x256xf32>
    %10 = vector.broadcast %8 : vector<4x1xf32> to vector<4x256xf32>
    %11 = vector.broadcast %9 : vector<1x256xf32> to vector<4x256xf32>
    %12 = arith.mulf %10, %11 : vector<4x256xf32>
    %13 = arith.addf %7, %12 : vector<4x256xf32>
    %14 = vector.extract_strided_slice %2 {offsets = [0, 2], sizes = [4, 1], strides = [1, 1]} : vector<4x4xf32> to vector<4x1xf32>
    %15 = vector.extract_strided_slice %1 {offsets = [2, 0], sizes = [1, 256], strides = [1, 1]} : vector<4x256xf32> to vector<1x256xf32>
    %16 = vector.broadcast %14 : vector<4x1xf32> to vector<4x256xf32>
    %17 = vector.broadcast %15 : vector<1x256xf32> to vector<4x256xf32>
    %18 = arith.mulf %16, %17 : vector<4x256xf32>
    %19 = arith.addf %13, %18 : vector<4x256xf32>
    %20 = vector.extract_strided_slice %2 {offsets = [0, 3], sizes = [4, 1], strides = [1, 1]} : vector<4x4xf32> to vector<4x1xf32>
    %21 = vector.extract_strided_slice %1 {offsets = [3, 0], sizes = [1, 256], strides = [1, 1]} : vector<4x256xf32> to vector<1x256xf32>
    %22 = vector.broadcast %20 : vector<4x1xf32> to vector<4x256xf32>
    %23 = vector.broadcast %21 : vector<1x256xf32> to vector<4x256xf32>
    %24 = arith.mulf %22, %23 : vector<4x256xf32>
    %25 = arith.addf %19, %24 : vector<4x256xf32>
    %c0_4 = arith.constant 0 : index
    %c0_5 = arith.constant 0 : index
    %26 = vector.load %arg4[%c0_4, %c0_5] : memref<4x1xf32, #tpu.memory_space<vmem>>, vector<4x1xf32>
    %27 = vector.broadcast %26 : vector<4x1xf32> to vector<4x256xf32>
    %28 = arith.addf %25, %27 : vector<4x256xf32>
    %29 = arith.addf %1, %28 : vector<4x256xf32>
    %c0_6 = arith.constant 0 : index
    %c0_7 = arith.constant 0 : index
    %c0_8 = arith.constant 0 : index
    %30 = vector.load %arg5[%c0_6, %c0_7, %c0_8] : memref<1x4x256xf32, #tpu.memory_space<vmem>>, vector<1x4x256xf32>
    %31 = vector.shape_cast %30 : vector<1x4x256xf32> to vector<4x256xf32>
    %32 = vector.shape_cast %29 : vector<4x256xf32> to vector<1x4x256xf32>
    tpu.vector_store %arg5[%c0_6, %c0_7, %c0_8], %32 {strides = array<i32>} : memref<1x4x256xf32, #tpu.memory_space<vmem>>, vector<1x4x256xf32>,
    return
  }
  func.func @transform_0(%arg0: i32, %arg1: i32) -> (i32, i32, i32) {
    %c0_i32 = arith.constant 0 : i32
    %c0_i32_0 = arith.constant 0 : i32
    return %arg0, %c0_i32, %arg1 : i32, i32, i32
  }
  func.func @transform_1(%arg0: i32, %arg1: i32) -> (i32, i32) {
    %c0_i32 = arith.constant 0 : i32
    %c0_i32_0 = arith.constant 0 : i32
    %c0_i32_1 = arith.constant 0 : i32
    return %c0_i32, %c0_i32_0 : i32, i32
  }
  func.func @transform_2(%arg0: i32, %arg1: i32) -> (i32, i32) {
    %c0_i32 = arith.constant 0 : i32
    %c0_i32_0 = arith.constant 0 : i32
    %c0_i32_1 = arith.constant 0 : i32
    return %c0_i32, %c0_i32_0 : i32, i32
  }
  func.func @transform_3(%arg0: i32, %arg1: i32) -> (i32, i32, i32) {
    %c0_i32 = arith.constant 0 : i32
    %c0_i32_0 = arith.constant 0 : i32
    return %arg0, %c0_i32, %arg1 : i32, i32, i32
  }
}

</mosaic_0001>

<bundles_post_ra>
// kernel: _fused_pw_conv_residual.1
= control target key start
LH: loop header
LB: loop body
LE: loop exit
PB: predicated region body
PF: predicated region fallthrough
CT: control target
= control target key end

     0   :  { %s512_s12 = smov 0   ;;  %s514_s13 = smov 0   ;;  %s558_s0 = inlined_call_operand.vmem [shape: f32[2,4,256], index: 0, kind: input, shape index: {}]   ;;  %s559_s1 = inlined_call_operand.vmem [shape: f32[4,4], index: 1, kind: input, shape index: {}]   ;;  %s560_s2 = inlined_call_operand.vmem [shape: f32[4,1], index: 2, kind: input, shape index: {}]   ;;  %s561_s3 = inlined_call_operand.vmem [shape: f32[2,4,256], index: 3, kind: output, shape index: {}]  }
   0x1   :  { %s516_s14 = smov 0  }
   0x2 LB: > { %s25_s15 = sadd.s32 1, %s482_s13  ;;  %p421_p0 = scmp.ge.s32.totalorder %s486_s14, 1  ;;  %s486_s14 = sphi %s516_s14, %s13_s14   ;;  %s482_s13 = sphi %s514_s13, %s563_s13   ;;  %s478_s12 = sphi %s512_s12, %s562_s12  }
   0x3   : > { %p27_p1 = scmp.ge.s32.totalorder %s25_s15, 2  ;;  %p158_p2 = scmp.lt.s32.totalorder %s486_s14, 3 }
   0x5   : > { %s565_s15 = smov (%p27_p1, %s25_s15), 0  ;;  %p159_p3 = pnand %p421_p0, %p158_p2 }
   0x6   : > { %v211_v0 = vld [vmem:[%s559_s1] sm:$0xf] (!%p159_p3)  ;;  %v488_v1 = vmov (!%p159_p3), 0   ;;  %v489_v2 = vmov (!%p159_p3), 2   ;;  %v490_v3 = vmov (!%p159_p3), 1   ;;  %v491_v4 = vmov (!%p159_p3), 3  }
   0x7   : > { %162 = sbr.rel (%p159_p3) target bundleno = 156 (0x9c), region = 32  ;;  %458 = vset.pattern.permute.xlu0 (!%p159_p3), %v488_v1  ;;  %460 = vset.pattern.permute.xlu1 (!%p159_p3), %v489_v2  ;;  %v316_v5 = vld [vmem:[%s560_s2] sm:$0xf] (!%p159_p3)  ;;  %p191_p4 = scmp.lt.s32.totalorder (!%p159_p3), %s478_s12, 1  ;;  %v218_v6 = vlaneseq (!%p159_p3) }
   0x8   : > { %214 = vperm.xlu0 (!%p159_p3), %458, %v211_v0   ;;  %265 = vperm.xlu1 (!%p159_p3), %460, %v211_v0  }
   0x9   : > { %v219_v7 = vshrl.u32 (!%p159_p3), %v218_v6, 7 }
   0xb   : > { %v220_v8 = vsub.s32 (!%p159_p3), 0, %v219_v7  ;;  %v224_v9 = vsub.s32 (!%p159_p3), 4, %v219_v7  ;;  %v244_v10 = vsub.s32 (!%p159_p3), 1, %v219_v7  ;;  %v248_v11 = vsub.s32 (!%p159_p3), 5, %v219_v7 }
   0xc   : > { %459 = vset.pattern.permute.xlu0 (!%p159_p3), %v490_v3  ;;  %461 = vset.pattern.permute.xlu1 (!%p159_p3), %v491_v4  ;;  %v270_v13 = vsub.s32 (!%p159_p3), 2, %v219_v7  ;;  %v274_v14 = vsub.s32 (!%p159_p3), 6, %v219_v7  ;;  %v296_v15 = vsub.s32 (!%p159_p3), 3, %v219_v7  ;;  %v300_v16 = vsub.s32 (!%p159_p3), 7, %v219_v7 }
   0xd   : > { %239 = vperm.xlu0 (!%p159_p3), %459, %v211_v0   ;;  %291 = vperm.xlu1 (!%p159_p3), %461, %v211_v0  }
   0xe   : > { %s567_s12 = smov (!%p191_p4, %s478_s12), 1 }
   0xf   : > { %s428_s20 = sshll.u32 %s567_s12, 3 }
  0x10   : > { %s198_s23 = scalar_lea.vmem %s558_s0, %s428_s20  ;;  %s208_s26 = scalar_lea.vmem %s561_s3, %s428_s20 }
  0x11   : > { %462 = vset.pattern.permute.xlu1 %v488_v1  ;;  %463 = vset.pattern.permute.xlu0 %v488_v1  ;;  %v210_v12 = vld [vmem:[%s198_s23] sm:$0xff] }
  0x12   : > { %319 = vperm.xlu1 %462, %v316_v5   ;;  %v221_v17 = vrot.slane %v210_v12, %v220_v8  ;;  %v225_v18 = vrot.slane %v210_v12, %v224_v9  ;;  %v245_v19 = vrot.slane %v210_v12, %v244_v10  ;;  %v249_v20 = vrot.slane %v210_v12, %v248_v11 }
  0x13   : > { %v271_v21 = vrot.slane %v210_v12, %v270_v13  ;;  %v275_v22 = vrot.slane %v210_v12, %v274_v14  ;;  %v297_v25 = vrot.slane %v210_v12, %v296_v15  ;;  %v301_v26 = vrot.slane %v210_v12, %v300_v16 }
  0x14   : > { %v231_v27 = vrot.slane %v221_v17, %v220_v8  ;;  %v235_v28 = vrot.slane %v225_v18, %v220_v8  ;;  %v255_v29 = vrot.slane %v245_v19, %v244_v10  ;;  %v259_v30 = vrot.slane %v249_v20, %v244_v10 }
  0x15   : > { %v281_v31 = vrot.slane %v271_v21, %v270_v13  ;;  %v285_v32 = vrot.slane %v275_v22, %v270_v13  ;;  %v307_v33 = vrot.slane %v297_v25, %v296_v15  ;;  %v311_v34 = vrot.slane %v301_v26, %v296_v15 }
  0x87   : > { %v215_v23 = vpop.permute.xlu0 %214  ;;  %v266_v24 = vpop.permute.xlu1 %265 }
  0x88   : > { %v236_v37 = vmul.f32 %v231_v27, %v215_v23  ;;  %v237_v38 = vmul.f32 %v235_v28, %v215_v23  ;;  %v286_v41 = vmul.f32 %v281_v31, %v266_v24  ;;  %v287_v42 = vmul.f32 %v285_v32, %v266_v24 }
  0x8c   : > { %v240_v35 = vpop.permute.xlu0 %239  ;;  %v292_v36 = vpop.permute.xlu1 %291 }
  0x8d   : > { %v260_v39 = vmul.f32 %v255_v29, %v240_v35  ;;  %v261_v40 = vmul.f32 %v259_v30, %v240_v35  ;;  %v312_v45 = vmul.f32 %v307_v33, %v292_v36  ;;  %v313_v46 = vmul.f32 %v311_v34, %v292_v36 }
  0x8f   : > { %v262_v43 = vadd.f32 %v260_v39, %v236_v37  ;;  %v263_v44 = vadd.f32 %v261_v40, %v237_v38 }
  0x91   : > { %v288_v47 = vadd.f32 %v286_v41, %v262_v43  ;;  %v289_v48 = vadd.f32 %v287_v42, %v263_v44  ;;  %v320_v49 = vpop.permute.xlu1 %319 }
  0x93   : > { %v314_v50 = vadd.f32 %v312_v45, %v288_v47  ;;  %v315_v51 = vadd.f32 %v313_v46, %v289_v48 }
  0x95   : > { %v322_v52 = vadd.f32 %v320_v49, %v314_v50  ;;  %v323_v53 = vadd.f32 %v320_v49, %v315_v51 }
  0x97   : > { %v326_v54 = vcombine.low %v322_v52, %v323_v53 }
  0x99   : > { %v328_v55 = vadd.f32 %v326_v54, %v210_v12 }
  0x9b   : > { %329 = vst [vmem:[%s208_s26] sm:$0xff] %v328_v55 }
  0x9c PF: > { %s13_s14 = sadd.s32 1, %s486_s14   ;;  %s562_s12 = smov %s482_s13 }
  0x9d   : > { %p10_p5 = scmp.ge.s32.totalorder %s13_s14, 4   ;;  %s563_s13 = smov %s565_s15 }
  0x9f   :  { %12 = sbr.rel (!%p10_p5) target bundleno = 2 (0x2), region = 62 }

</bundles_post_ra>
